<compile_context>
chip_gen: v7x
topology: tpu7x:2x2x1
jax: 0.10.0
libtpu: 0.0.40
codegen_flags: <defaults>
</compile_context>

<pallas_src>
import numpy as np

import jax
import jax.numpy as jnp
from jax.experimental import pallas as pl
from jax.experimental.pallas import tpu as pltpu


# ----------------------------------------------------------------------------
# Model configuration
# ----------------------------------------------------------------------------
FEAT_NAMES = ["layer1", "layer2"]
FEAT_DIMS = [8, 16]
POOLING_OPS = ["AdaptiveAvgPool2d(1)", "AdaptiveAvgPool2d(1)"]
L2_NORM = [False, True]          # layer2 features are l2-normalized over dim=-1 (W)
N_CLASSES = 10

_VMEM = pl.BlockSpec(memory_space=pltpu.MemorySpace.VMEM)


# ----------------------------------------------------------------------------
# Fused Pallas kernel
# ----------------------------------------------------------------------------
def _most_fused_kernel(xs_ref, t1_ref, b1_ref, t2_ref, b2_ref,
                       s_ref, a_ref, bsum_ref,
                       wc0_ref, bc0_ref, wc1_ref, bc1_ref,
                       out0_ref, out1_ref):
    """Fused MOSTModel forward.

    xs_ref   : [6, N*H2, W*C_in]   input row slabs; slab[par*3+dh] row (n,k) is
                                   H-padded input row 4k + 2*par + dh of image n
                                   flattened as (w, c_in) on the lane axis.
    t1_ref   : [3, W*C_in, W1*C1]  conv1 row-Toeplitz weights (stride-2 column
                                   selection + W padding folded in host-side).
    b1_ref   : [1, W1*C1]          conv1 bias tiled over W1.
    t2_ref   : [3, W1*C1, W2*C2]   conv2 row-Toeplitz weights.
    b2_ref   : [1, W2*C2]
    s_ref    : [N*H2, N*H2]        per-image one-row down-shift (zero top row).
    a_ref    : [N, N*H2]           per-image row aggregation (pooling over H).
    bsum_ref : [W2*C2, W2*C2]      per-channel sum over W2, broadcast back.
    wc0_ref  : [W1*C1, n_classes]  classifier0 weight with AvgPool folded in.
    bc0_ref  : [1, n_classes]
    wc1_ref  : [W2*C2, n_classes]  classifier1 weight with AvgPool folded in.
    bc1_ref  : [1, n_classes]
    out0_ref : [N, n_classes]      layer1 logits
    out1_ref : [N, n_classes]      layer2 logits
    """
    f32 = jnp.float32

    def dot(a, b):
        return jnp.dot(a, b, preferred_element_type=f32)

    # ---- conv1 + ReLU, split by output-row parity ---------------------------
    # e rows = conv1 output rows 2k, o rows = conv1 output rows 2k+1.
    e = dot(xs_ref[0], t1_ref[0]) + dot(xs_ref[1], t1_ref[1]) + dot(xs_ref[2], t1_ref[2])
    o = dot(xs_ref[3], t1_ref[0]) + dot(xs_ref[4], t1_ref[1]) + dot(xs_ref[5], t1_ref[2])
    e = jnp.maximum(e + b1_ref[...], 0.0)          # [N*H2, W1*C1]
    o = jnp.maximum(o + b1_ref[...], 0.0)          # [N*H2, W1*C1]

    # ---- conv2 + ReLU --------------------------------------------------------
    # Row taps: dh=0 -> per-image down-shift of o (zero top pad row),
    #           dh=1 -> e, dh=2 -> o.
    o_shift = dot(s_ref[...], o)                   # [N*H2, W1*C1]
    f2 = dot(o_shift, t2_ref[0]) + dot(e, t2_ref[1]) + dot(o, t2_ref[2])
    f2 = jnp.maximum(f2 + b2_ref[...], 0.0)        # [N*H2, W2*C2]

    # ---- classifier 0 (layer1): AdaptiveAvgPool2d(1) -> Linear ---------------
    # Pool scale and the (j, c) lane layout are folded into wc0.
    out0_ref[...] = dot(a_ref[...], dot(e + o, wc0_ref[...])) + bc0_ref[...]

    # ---- classifier 1 (layer2): l2-norm over W -> pool -> Linear --------------
    # F.normalize(x, p=2, dim=-1) == x * rsqrt(clamp_min(sum(x^2), 1e-24))
    ssq = dot(f2 * f2, bsum_ref[...])              # per-channel sum over W2, broadcast
    f2n = f2 * jax.lax.rsqrt(jnp.maximum(ssq, 1e-24))
    out1_ref[...] = dot(a_ref[...], dot(f2n, wc1_ref[...])) + bc1_ref[...]


# ----------------------------------------------------------------------------
# Host-side constant helpers (shape-only, numpy)
# ----------------------------------------------------------------------------
def _col_select_np(w_in, w_out):
    """sel[dw, j, w] = 1 iff w == 2*j + dw - 1  (3x3 conv, stride 2, pad 1)."""
    sel = np.zeros((3, w_out, w_in), np.float32)
    for dw in range(3):
        for j in range(w_out):
            w = 2 * j + dw - 1
            if 0 <= w < w_in:
                sel[dw, j, w] = 1.0
    return sel


def _shift_matrix_np(n, h):
    """S @ x shifts each image's h rows down by one, zero-filling the top row."""
    g = np.arange(n * h)
    return ((g[:, None] == g[None, :] + 1) & (g[:, None] % h != 0)).astype(np.float32)


def _pool_agg_np(n, h):
    """A[n, g] = 1 iff row g belongs to image n (g // h == n)."""
    g = np.arange(n * h)
    return (g[None, :] // h == np.arange(n)[:, None]).astype(np.float32)


def _chan_sum_np(w, c):
    """B[a, b] = 1 iff a % c == b % c: sums squares over W per channel, broadcast."""
    a = np.arange(w * c)
    return ((a[:, None] % c) == (a[None, :] % c)).astype(np.float32)


# ----------------------------------------------------------------------------
# Wrapper
# ----------------------------------------------------------------------------
def most_model_forward(params, x):
    """MOSTModel.forward: frozen 2-conv feature extractor + per-feature heads,
    executed in a single fused Pallas TPU kernel."""
    N, C_in, H, W = x.shape
    assert H % 4 == 0 and W % 4 == 0, "kernel assumes H, W divisible by 4"
    C1 = params["conv1_w"].shape[0]
    C2 = params["conv2_w"].shape[0]
    H1, W1 = H // 2, W // 2
    H2, W2 = H1 // 2, W1 // 2
    n_cls = params["cls0_w"].shape[0]

    # --- layout plumbing (pure XLA, ~1.5x data) -------------------------------
    # NCHW -> [N, H, W*C_in] (channels minor on the lane axis), pad H by 1,
    # then pre-slice the six stride-4 row slabs the kernel needs:
    # slab[par*3+dh] row (n, k) = H-padded row 4k + 2*par + dh of image n.
    x_rows = jnp.transpose(x, (0, 2, 3, 1)).reshape(N, H, W * C_in)
    x_pad = jnp.pad(x_rows, ((0, 0), (1, 1), (0, 0)))
    slabs = []
    for par in range(2):
        for dh in range(3):
            start = 2 * par + dh
            stop = start + 4 * (H2 - 1) + 1
            slabs.append(x_pad[:, start:stop:4, :].reshape(N * H2, W * C_in))
    x_slabs = jnp.stack(slabs, axis=0)                       # [6, N*H2, W*C_in]

    # --- fold stride-2 column selection + W padding into Toeplitz weights -----
    p1 = jnp.asarray(_col_select_np(W, W1))                  # [3, W1, W]
    p2 = jnp.asarray(_col_select_np(W1, W2))                 # [3, W2, W1]
    # T[dh][w*C_in + ci, j*C_out + co] = conv_w[co, ci, dh, w - 2*j + 1]
    t1 = jnp.einsum("ajw,oida->dwijo", p1, params["conv1_w"]
                    ).reshape(3, W * C_in, W1 * C1)
    t2 = jnp.einsum("ajw,oida->dwijo", p2, params["conv2_w"]
                    ).reshape(3, W1 * C1, W2 * C2)
    b1row = jnp.tile(params["conv1_b"], W1).reshape(1, W1 * C1)
    b2row = jnp.tile(params["conv2_b"], W2).reshape(1, W2 * C2)

    # --- constant routing matrices --------------------------------------------
    s_mat = jnp.asarray(_shift_matrix_np(N, H2))             # [N*H2, N*H2]
    a_mat = jnp.asarray(_pool_agg_np(N, H2))                 # [N, N*H2]
    bsum = jnp.asarray(_chan_sum_np(W2, C2))                 # [W2*C2, W2*C2]

    # --- fold AdaptiveAvgPool2d(1) + lane layout into the classifier weights ---
    wc0 = jnp.tile(params["cls0_w"].T, (W1, 1)) * (1.0 / (H1 * W1))   # [W1*C1, n_cls]
    wc1 = jnp.tile(params["cls1_w"].T, (W2, 1)) * (1.0 / (H2 * W2))   # [W2*C2, n_cls]
    bc0 = params["cls0_b"].reshape(1, n_cls)
    bc1 = params["cls1_b"].reshape(1, n_cls)

    logits0, logits1 = pl.pallas_call(
        _most_fused_kernel,
        out_shape=(jax.ShapeDtypeStruct((N, n_cls), jnp.float32),
                   jax.ShapeDtypeStruct((N, n_cls), jnp.float32)),
        in_specs=[_VMEM] * 12,
        out_specs=(_VMEM, _VMEM),
        cost_estimate=pl.CostEstimate(flops=700_000, transcendentals=512,
                                      bytes_accessed=140_000),
    )(x_slabs, t1, b1row, t2, b2row, s_mat, a_mat, bsum, wc0, bc0, wc1, bc1)

    return {FEAT_NAMES[0]: logits0, FEAT_NAMES[1]: logits1}


# ----------------------------------------------------------------------------
# Parameters and pure-JAX reference (for sanity checking)
# ----------------------------------------------------------------------------
def init_params(key):
    ks = jax.random.split(key, 8)
    return {
        # frozen synthetic feature extractor (stands in for the user's backbone)
        "conv1_w": 0.1 * jax.random.normal(ks[0], (8, 4, 3, 3), jnp.float32),
        "conv1_b": 0.1 * jax.random.normal(ks[1], (8,), jnp.float32),
        "conv2_w": 0.1 * jax.random.normal(ks[2], (16, 8, 3, 3), jnp.float32),
        "conv2_b": 0.1 * jax.random.normal(ks[3], (16,), jnp.float32),
        # per-feature classifiers: nn.Linear(feat_dim, n_classes)
        "cls0_w": 0.1 * jax.random.normal(ks[4], (N_CLASSES, FEAT_DIMS[0]), jnp.float32),
        "cls0_b": 0.1 * jax.random.normal(ks[5], (N_CLASSES,), jnp.float32),
        "cls1_w": 0.1 * jax.random.normal(ks[6], (N_CLASSES, FEAT_DIMS[1]), jnp.float32),
        "cls1_b": 0.1 * jax.random.normal(ks[7], (N_CLASSES,), jnp.float32),
    }


def most_model_reference(params, x):
    """Pure-JAX reference with identical semantics."""
    def conv(h, w, b):
        y = jax.lax.conv_general_dilated(
            h, w, window_strides=(2, 2), padding=((1, 1), (1, 1)),
            dimension_numbers=("NCHW", "OIHW", "NCHW"))
        return jnp.maximum(y + b.reshape(1, -1, 1, 1), 0.0)

    f1 = conv(x, params["conv1_w"], params["conv1_b"])
    f2 = conv(f1, params["conv2_w"], params["conv2_b"])
    embs = {"layer1": f1, "layer2": f2}
    out = {}
    for i, ft in enumerate(FEAT_NAMES):
        e = embs[ft]
        if L2_NORM[i]:
            nrm = jnp.sqrt(jnp.sum(e * e, axis=-1, keepdims=True))
            e = e / jnp.maximum(nrm, 1e-12)
        pooled = jnp.mean(e, axis=(2, 3))                 # AdaptiveAvgPool2d(1)
        out[ft] = pooled @ params[f"cls{i}_w"].T + params[f"cls{i}_b"]
    return out


# ----------------------------------------------------------------------------
if __name__ == "__main__":
    key = jax.random.PRNGKey(0)
    k_param, k_x = jax.random.split(key)
    params = init_params(k_param)
    x = jax.random.normal(k_x, (2, 4, 16, 16), jnp.float32)   # NCHW input

    fwd = jax.jit(most_model_forward)
    out = jax.block_until_ready(fwd(params, x))
    ref = jax.block_until_ready(most_model_reference(params, x))

    for ft in FEAT_NAMES:
        assert out[ft].shape == (2, N_CLASSES), out[ft].shape
        assert jnp.allclose(out[ft], ref[ft], atol=2e-3, rtol=2e-3), (
            f"mismatch on {ft}")

    print("KERNEL_OK")
</pallas_src>

<mosaic_0001>
module attributes {stable_mosaic.version = 11 : i64} {
  func.func @_most_fused_kernel(%arg0: memref<6x8x64xf32, #tpu.memory_space<vmem>>, %arg1: memref<3x64x64xf32, #tpu.memory_space<vmem>>, %arg2: memref<1x64xf32, #tpu.memory_space<vmem>>, %arg3: memref<3x64x64xf32, #tpu.memory_space<vmem>>, %arg4: memref<1x64xf32, #tpu.memory_space<vmem>>, %arg5: memref<8x8xf32, #tpu.memory_space<vmem>>, %arg6: memref<2x8xf32, #tpu.memory_space<vmem>>, %arg7: memref<64x64xf32, #tpu.memory_space<vmem>>, %arg8: memref<64x10xf32, #tpu.memory_space<vmem>>, %arg9: memref<1x10xf32, #tpu.memory_space<vmem>>, %arg10: memref<64x10xf32, #tpu.memory_space<vmem>>, %arg11: memref<1x10xf32, #tpu.memory_space<vmem>>, %arg12: memref<2x10xf32, #tpu.memory_space<vmem>>, %arg13: memref<2x10xf32, #tpu.memory_space<vmem>>) attributes {dimension_semantics = [], scalar_prefetch = 0 : i64, scratch_operands = 0 : i64, tpu.core_type = #tpu.core_type<tc>} {
    %c0 = arith.constant 0 : index
    %c0_0 = arith.constant 0 : index
    %c0_1 = arith.constant 0 : index
    %0 = vector.load %arg0[%c0, %c0_0, %c0_1] : memref<6x8x64xf32, #tpu.memory_space<vmem>>, vector<1x8x64xf32>
    %1 = vector.shape_cast %0 : vector<1x8x64xf32> to vector<8x64xf32>
    %c0_2 = arith.constant 0 : index
    %c0_3 = arith.constant 0 : index
    %c0_4 = arith.constant 0 : index
    %2 = vector.load %arg1[%c0_2, %c0_3, %c0_4] : memref<3x64x64xf32, #tpu.memory_space<vmem>>, vector<1x64x64xf32>
    %3 = vector.shape_cast %2 : vector<1x64x64xf32> to vector<64x64xf32>
    %cst = arith.constant dense<0.000000e+00> : vector<8x64xf32>
    %4 = tpu.matmul %1, %3, %cst {dimension_numbers = #tpu.dot_dimension_numbers<[1], [0], [0], [1], [0, 0, 1, 1], [], []>} : vector<8x64xf32>, vector<64x64xf32>, vector<8x64xf32> -> vector<8x64xf32>
    %c1 = arith.constant 1 : index
    %c0_5 = arith.constant 0 : index
    %c0_6 = arith.constant 0 : index
    %5 = vector.load %arg0[%c1, %c0_5, %c0_6] : memref<6x8x64xf32, #tpu.memory_space<vmem>>, vector<1x8x64xf32>
    %6 = vector.shape_cast %5 : vector<1x8x64xf32> to vector<8x64xf32>
    %c1_7 = arith.constant 1 : index
    %c0_8 = arith.constant 0 : index
    %c0_9 = arith.constant 0 : index
    %7 = vector.load %arg1[%c1_7, %c0_8, %c0_9] : memref<3x64x64xf32, #tpu.memory_space<vmem>>, vector<1x64x64xf32>
    %8 = vector.shape_cast %7 : vector<1x64x64xf32> to vector<64x64xf32>
    %cst_10 = arith.constant dense<0.000000e+00> : vector<8x64xf32>
    %9 = tpu.matmul %6, %8, %cst_10 {dimension_numbers = #tpu.dot_dimension_numbers<[1], [0], [0], [1], [0, 0, 1, 1], [], []>} : vector<8x64xf32>, vector<64x64xf32>, vector<8x64xf32> -> vector<8x64xf32>
    %10 = arith.addf %4, %9 : vector<8x64xf32>
    %c2 = arith.constant 2 : index
    %c0_11 = arith.constant 0 : index
    %c0_12 = arith.constant 0 : index
    %11 = vector.load %arg0[%c2, %c0_11, %c0_12] : memref<6x8x64xf32, #tpu.memory_space<vmem>>, vector<1x8x64xf32>
    %12 = vector.shape_cast %11 : vector<1x8x64xf32> to vector<8x64xf32>
    %c2_13 = arith.constant 2 : index
    %c0_14 = arith.constant 0 : index
    %c0_15 = arith.constant 0 : index
    %13 = vector.load %arg1[%c2_13, %c0_14, %c0_15] : memref<3x64x64xf32, #tpu.memory_space<vmem>>, vector<1x64x64xf32>
    %14 = vector.shape_cast %13 : vector<1x64x64xf32> to vector<64x64xf32>
    %cst_16 = arith.constant dense<0.000000e+00> : vector<8x64xf32>
    %15 = tpu.matmul %12, %14, %cst_16 {dimension_numbers = #tpu.dot_dimension_numbers<[1], [0], [0], [1], [0, 0, 1, 1], [], []>} : vector<8x64xf32>, vector<64x64xf32>, vector<8x64xf32> -> vector<8x64xf32>
    %16 = arith.addf %10, %15 : vector<8x64xf32>
    %c3 = arith.constant 3 : index
    %c0_17 = arith.constant 0 : index
    %c0_18 = arith.constant 0 : index
    %17 = vector.load %arg0[%c3, %c0_17, %c0_18] : memref<6x8x64xf32, #tpu.memory_space<vmem>>, vector<1x8x64xf32>
    %18 = vector.shape_cast %17 : vector<1x8x64xf32> to vector<8x64xf32>
    %c0_19 = arith.constant 0 : index
    %c0_20 = arith.constant 0 : index
    %c0_21 = arith.constant 0 : index
    %19 = vector.load %arg1[%c0_19, %c0_20, %c0_21] : memref<3x64x64xf32, #tpu.memory_space<vmem>>, vector<1x64x64xf32>
    %20 = vector.shape_cast %19 : vector<1x64x64xf32> to vector<64x64xf32>
    %cst_22 = arith.constant dense<0.000000e+00> : vector<8x64xf32>
    %21 = tpu.matmul %18, %20, %cst_22 {dimension_numbers = #tpu.dot_dimension_numbers<[1], [0], [0], [1], [0, 0, 1, 1], [], []>} : vector<8x64xf32>, vector<64x64xf32>, vector<8x64xf32> -> vector<8x64xf32>
    %c4 = arith.constant 4 : index
    %c0_23 = arith.constant 0 : index
    %c0_24 = arith.constant 0 : index
    %22 = vector.load %arg0[%c4, %c0_23, %c0_24] : memref<6x8x64xf32, #tpu.memory_space<vmem>>, vector<1x8x64xf32>
    %23 = vector.shape_cast %22 : vector<1x8x64xf32> to vector<8x64xf32>
    %c1_25 = arith.constant 1 : index
    %c0_26 = arith.constant 0 : index
    %c0_27 = arith.constant 0 : index
    %24 = vector.load %arg1[%c1_25, %c0_26, %c0_27] : memref<3x64x64xf32, #tpu.memory_space<vmem>>, vector<1x64x64xf32>
    %25 = vector.shape_cast %24 : vector<1x64x64xf32> to vector<64x64xf32>
    %cst_28 = arith.constant dense<0.000000e+00> : vector<8x64xf32>
    %26 = tpu.matmul %23, %25, %cst_28 {dimension_numbers = #tpu.dot_dimension_numbers<[1], [0], [0], [1], [0, 0, 1, 1], [], []>} : vector<8x64xf32>, vector<64x64xf32>, vector<8x64xf32> -> vector<8x64xf32>
    %27 = arith.addf %21, %26 : vector<8x64xf32>
    %c5 = arith.constant 5 : index
    %c0_29 = arith.constant 0 : index
    %c0_30 = arith.constant 0 : index
    %28 = vector.load %arg0[%c5, %c0_29, %c0_30] : memref<6x8x64xf32, #tpu.memory_space<vmem>>, vector<1x8x64xf32>
    %29 = vector.shape_cast %28 : vector<1x8x64xf32> to vector<8x64xf32>
    %c2_31 = arith.constant 2 : index
    %c0_32 = arith.constant 0 : index
    %c0_33 = arith.constant 0 : index
    %30 = vector.load %arg1[%c2_31, %c0_32, %c0_33] : memref<3x64x64xf32, #tpu.memory_space<vmem>>, vector<1x64x64xf32>
    %31 = vector.shape_cast %30 : vector<1x64x64xf32> to vector<64x64xf32>
    %cst_34 = arith.constant dense<0.000000e+00> : vector<8x64xf32>
    %32 = tpu.matmul %29, %31, %cst_34 {dimension_numbers = #tpu.dot_dimension_numbers<[1], [0], [0], [1], [0, 0, 1, 1], [], []>} : vector<8x64xf32>, vector<64x64xf32>, vector<8x64xf32> -> vector<8x64xf32>
    %33 = arith.addf %27, %32 : vector<8x64xf32>
    %c0_35 = arith.constant 0 : index
    %c0_36 = arith.constant 0 : index
    %34 = vector.load %arg2[%c0_35, %c0_36] : memref<1x64xf32, #tpu.memory_space<vmem>>, vector<1x64xf32>
    %35 = vector.broadcast %34 : vector<1x64xf32> to vector<8x64xf32>
    %36 = arith.addf %16, %35 : vector<8x64xf32>
    %cst_37 = arith.constant 0.000000e+00 : f32
    %37 = vector.broadcast %cst_37 : f32 to vector<8x64xf32>
    %38 = arith.maximumf %36, %37 : vector<8x64xf32>
    %c0_38 = arith.constant 0 : index
    %c0_39 = arith.constant 0 : index
    %39 = vector.load %arg2[%c0_38, %c0_39] : memref<1x64xf32, #tpu.memory_space<vmem>>, vector<1x64xf32>
    %40 = vector.broadcast %39 : vector<1x64xf32> to vector<8x64xf32>
    %41 = arith.addf %33, %40 : vector<8x64xf32>
    %cst_40 = arith.constant 0.000000e+00 : f32
    %42 = vector.broadcast %cst_40 : f32 to vector<8x64xf32>
    %43 = arith.maximumf %41, %42 : vector<8x64xf32>
    %c0_41 = arith.constant 0 : index
    %c0_42 = arith.constant 0 : index
    %44 = vector.load %arg5[%c0_41, %c0_42] : memref<8x8xf32, #tpu.memory_space<vmem>>, vector<8x8xf32>
    %cst_43 = arith.constant dense<0.000000e+00> : vector<8x64xf32>
    %45 = tpu.matmul %44, %43, %cst_43 {dimension_numbers = #tpu.dot_dimension_numbers<[1], [0], [0], [1], [0, 0, 1, 1], [], []>} : vector<8x8xf32>, vector<8x64xf32>, vector<8x64xf32> -> vector<8x64xf32>
    %c0_44 = arith.constant 0 : index
    %c0_45 = arith.constant 0 : index
    %c0_46 = arith.constant 0 : index
    %46 = vector.load %arg3[%c0_44, %c0_45, %c0_46] : memref<3x64x64xf32, #tpu.memory_space<vmem>>, vector<1x64x64xf32>
    %47 = vector.shape_cast %46 : vector<1x64x64xf32> to vector<64x64xf32>
    %cst_47 = arith.constant dense<0.000000e+00> : vector<8x64xf32>
    %48 = tpu.matmul %45, %47, %cst_47 {dimension_numbers = #tpu.dot_dimension_numbers<[1], [0], [0], [1], [0, 0, 1, 1], [], []>} : vector<8x64xf32>, vector<64x64xf32>, vector<8x64xf32> -> vector<8x64xf32>
    %c1_48 = arith.constant 1 : index
    %c0_49 = arith.constant 0 : index
    %c0_50 = arith.constant 0 : index
    %49 = vector.load %arg3[%c1_48, %c0_49, %c0_50] : memref<3x64x64xf32, #tpu.memory_space<vmem>>, vector<1x64x64xf32>
    %50 = vector.shape_cast %49 : vector<1x64x64xf32> to vector<64x64xf32>
    %cst_51 = arith.constant dense<0.000000e+00> : vector<8x64xf32>
    %51 = tpu.matmul %38, %50, %cst_51 {dimension_numbers = #tpu.dot_dimension_numbers<[1], [0], [0], [1], [0, 0, 1, 1], [], []>} : vector<8x64xf32>, vector<64x64xf32>, vector<8x64xf32> -> vector<8x64xf32>
    %52 = arith.addf %48, %51 : vector<8x64xf32>
    %c2_52 = arith.constant 2 : index
    %c0_53 = arith.constant 0 : index
    %c0_54 = arith.constant 0 : index
    %53 = vector.load %arg3[%c2_52, %c0_53, %c0_54] : memref<3x64x64xf32, #tpu.memory_space<vmem>>, vector<1x64x64xf32>
    %54 = vector.shape_cast %53 : vector<1x64x64xf32> to vector<64x64xf32>
    %cst_55 = arith.constant dense<0.000000e+00> : vector<8x64xf32>
    %55 = tpu.matmul %43, %54, %cst_55 {dimension_numbers = #tpu.dot_dimension_numbers<[1], [0], [0], [1], [0, 0, 1, 1], [], []>} : vector<8x64xf32>, vector<64x64xf32>, vector<8x64xf32> -> vector<8x64xf32>
    %56 = arith.addf %52, %55 : vector<8x64xf32>
    %c0_56 = arith.constant 0 : index
    %c0_57 = arith.constant 0 : index
    %57 = vector.load %arg4[%c0_56, %c0_57] : memref<1x64xf32, #tpu.memory_space<vmem>>, vector<1x64xf32>
    %58 = vector.broadcast %57 : vector<1x64xf32> to vector<8x64xf32>
    %59 = arith.addf %56, %58 : vector<8x64xf32>
    %cst_58 = arith.constant 0.000000e+00 : f32
    %60 = vector.broadcast %cst_58 : f32 to vector<8x64xf32>
    %61 = arith.maximumf %59, %60 : vector<8x64xf32>
    %c0_59 = arith.constant 0 : index
    %c0_60 = arith.constant 0 : index
    %62 = vector.load %arg6[%c0_59, %c0_60] : memref<2x8xf32, #tpu.memory_space<vmem>>, vector<2x8xf32>
    %63 = arith.addf %38, %43 : vector<8x64xf32>
    %c0_61 = arith.constant 0 : index
    %c0_62 = arith.constant 0 : index
    %64 = vector.load %arg8[%c0_61, %c0_62] : memref<64x10xf32, #tpu.memory_space<vmem>>, vector<64x10xf32>
    %cst_63 = arith.constant dense<0.000000e+00> : vector<8x10xf32>
    %65 = tpu.matmul %63, %64, %cst_63 {dimension_numbers = #tpu.dot_dimension_numbers<[1], [0], [0], [1], [0, 0, 1, 1], [], []>} : vector<8x64xf32>, vector<64x10xf32>, vector<8x10xf32> -> vector<8x10xf32>
    %cst_64 = arith.constant dense<0.000000e+00> : vector<2x10xf32>
    %66 = tpu.matmul %62, %65, %cst_64 {dimension_numbers = #tpu.dot_dimension_numbers<[1], [0], [0], [1], [0, 0, 1, 1], [], []>} : vector<2x8xf32>, vector<8x10xf32>, vector<2x10xf32> -> vector<2x10xf32>
    %c0_65 = arith.constant 0 : index
    %c0_66 = arith.constant 0 : index
    %67 = vector.load %arg9[%c0_65, %c0_66] : memref<1x10xf32, #tpu.memory_space<vmem>>, vector<1x10xf32>
    %68 = vector.broadcast %67 : vector<1x10xf32> to vector<2x10xf32>
    %69 = arith.addf %66, %68 : vector<2x10xf32>
    %c0_67 = arith.constant 0 : index
    %c0_68 = arith.constant 0 : index
    %70 = vector.load %arg12[%c0_67, %c0_68] : memref<2x10xf32, #tpu.memory_space<vmem>>, vector<2x10xf32>
    tpu.vector_store %arg12[%c0_67, %c0_68], %69 {strides = array<i32>} : memref<2x10xf32, #tpu.memory_space<vmem>>, vector<2x10xf32>,
    %71 = arith.mulf %61, %61 : vector<8x64xf32>
    %c0_69 = arith.constant 0 : index
    %c0_70 = arith.constant 0 : index
    %72 = vector.load %arg7[%c0_69, %c0_70] : memref<64x64xf32, #tpu.memory_space<vmem>>, vector<64x64xf32>
    %cst_71 = arith.constant dense<0.000000e+00> : vector<8x64xf32>
    %73 = tpu.matmul %71, %72, %cst_71 {dimension_numbers = #tpu.dot_dimension_numbers<[1], [0], [0], [1], [0, 0, 1, 1], [], []>} : vector<8x64xf32>, vector<64x64xf32>, vector<8x64xf32> -> vector<8x64xf32>
    %cst_72 = arith.constant 1.000000e-24 : f32
    %74 = vector.broadcast %cst_72 : f32 to vector<8x64xf32>
    %75 = arith.maximumf %73, %74 : vector<8x64xf32>
    %76 = math.rsqrt %75 : vector<8x64xf32>
    %77 = arith.mulf %61, %76 : vector<8x64xf32>
    %c0_73 = arith.constant 0 : index
    %c0_74 = arith.constant 0 : index
    %78 = vector.load %arg6[%c0_73, %c0_74] : memref<2x8xf32, #tpu.memory_space<vmem>>, vector<2x8xf32>
    %c0_75 = arith.constant 0 : index
    %c0_76 = arith.constant 0 : index
    %79 = vector.load %arg10[%c0_75, %c0_76] : memref<64x10xf32, #tpu.memory_space<vmem>>, vector<64x10xf32>
    %cst_77 = arith.constant dense<0.000000e+00> : vector<8x10xf32>
    %80 = tpu.matmul %77, %79, %cst_77 {dimension_numbers = #tpu.dot_dimension_numbers<[1], [0], [0], [1], [0, 0, 1, 1], [], []>} : vector<8x64xf32>, vector<64x10xf32>, vector<8x10xf32> -> vector<8x10xf32>
    %cst_78 = arith.constant dense<0.000000e+00> : vector<2x10xf32>
    %81 = tpu.matmul %78, %80, %cst_78 {dimension_numbers = #tpu.dot_dimension_numbers<[1], [0], [0], [1], [0, 0, 1, 1], [], []>} : vector<2x8xf32>, vector<8x10xf32>, vector<2x10xf32> -> vector<2x10xf32>
    %c0_79 = arith.constant 0 : index
    %c0_80 = arith.constant 0 : index
    %82 = vector.load %arg11[%c0_79, %c0_80] : memref<1x10xf32, #tpu.memory_space<vmem>>, vector<1x10xf32>
    %83 = vector.broadcast %82 : vector<1x10xf32> to vector<2x10xf32>
    %84 = arith.addf %81, %83 : vector<2x10xf32>
    %c0_81 = arith.constant 0 : index
    %c0_82 = arith.constant 0 : index
    %85 = vector.load %arg13[%c0_81, %c0_82] : memref<2x10xf32, #tpu.memory_space<vmem>>, vector<2x10xf32>
    tpu.vector_store %arg13[%c0_81, %c0_82], %84 {strides = array<i32>} : memref<2x10xf32, #tpu.memory_space<vmem>>, vector<2x10xf32>,
    return
  }
}

</mosaic_0001>

<bundles_post_ra>
// kernel: tile.23
= control target key start
LH: loop header
LB: loop body
LE: loop exit
PB: predicated region body
PF: predicated region fallthrough
CT: control target
= control target key end

     0   :  { %s22_s0 = inlined_call_operand.vmem [shape: f32[8], index: 0, kind: input, shape index: {}]   ;;  %s23_s1 = inlined_call_operand.vmem [shape: f32[8,8], index: 1, kind: output, shape index: {}]  }
   0x1   :  { %v4_v0 = vld [vmem:[%s22_s0] ss:$0 sm:$0xff] }
   0x2   :  { %5 = vst [vmem:[%s23_s1] sm:$0xff] %v4_v0 }

// kernel: tile.24
= control target key start
LH: loop header
LB: loop body
LE: loop exit
PB: predicated region body
PF: predicated region fallthrough
CT: control target
= control target key end

     0   :  { %s67_s10 = smov 56   ;;  %s68_s11 = smov 40   ;;  %vm3_vm0 = vcmask 64512   ;;  %vm9_vm1 = vcmask 523712   ;;  %vm15_vm2 = vcmask 458112   ;;  %vm21_vm3 = vcmask 392512   ;;  %s111_s0 = inlined_call_operand.vmem [shape: f32[8,8], index: 0, kind: input, shape index: {}]   ;;  %s112_s1 = inlined_call_operand.vmem [shape: f32[1,64], index: 1, kind: output, shape index: {}]  }
   0x1   :  { %v53_v0 = vld [vmem:[%s111_s0 + $0x7] sm:$0x1]   ;;  %v55_v1 = vld [vmem:[%s111_s0 + $0x5] sm:$0x1]   ;;  %v54_v2 = vld [vmem:[%s111_s0 + $0x6] sm:$0x1]  }
   0x2   :  { %7 = vrot.lane.b32.xlu0 %v53_v0, %s67_s10  ;;  %19 = vrot.lane.b32.xlu1 %v55_v1, %s68_s11  ;;  %v56_v3 = vld [vmem:[%s111_s0 + $0x4] sm:$0x1]   ;;  %v2_v4 = vld [vmem:[%s111_s0] sm:$0x1]   ;;  %s69_s18 = smov 48   ;;  %s70_s19 = smov 32  }
   0x3   :  { %4 = vst.msk [vmem:[#allocation0] sm:$0x1] %vm3_vm0, %v2_v4   ;;  %v57_v5 = vld [vmem:[%s111_s0 + $0x3] sm:$0x1]   ;;  %v58_v6 = vld [vmem:[%s111_s0 + $0x2] sm:$0x1]  }
   0x4   :  { %s71_s24 = smov 24   ;;  %s72_s25 = smov 16   ;;  %v59_v7 = vld [vmem:[%s111_s0 + $0x1] sm:$0x1]   ;;  %vm27_vm4 = vcmask 326912   ;;  %vm33_vm5 = vcmask 261312  }
   0x5   :  { %s73_s0 = smov 8   ;;  %vm39_vm6 = vcmask 195712   ;;  %vm45_vm7 = vcmask 130112  }
   0x6   :  { %13 = vrot.lane.b32.xlu0 %v54_v2, %s69_s18  ;;  %25 = vrot.lane.b32.xlu1 %v56_v3, %s70_s19 }
   0xa   :  { %31 = vrot.lane.b32.xlu0 %v57_v5, %s71_s24  ;;  %37 = vrot.lane.b32.xlu1 %v58_v6, %s72_s25 }
   0xe   :  { %43 = vrot.lane.b32.xlu0 %v59_v7, %s73_s0 }
  0x74   :  { %v8_v8 = vpop.permute.xlu0 %7   ;;  %v20_v9 = vpop.permute.xlu1 %19  }
  0x75   :  { %10 = vst.msk [vmem:[#allocation0] sm:$0x1] %vm9_vm1, %v8_v8  }
  0x78   :  { %v14_v10 = vpop.permute.xlu0 %13   ;;  %v26_v11 = vpop.permute.xlu1 %25  }
  0x79   :  { %16 = vst.msk [vmem:[#allocation0] sm:$0x1] %vm15_vm2, %v14_v10  }
  0x7a   :  { %22 = vst.msk [vmem:[#allocation0] sm:$0x1] %vm21_vm3, %v20_v9  }
  0x7b   :  { %28 = vst.msk [vmem:[#allocation0] sm:$0x1] %vm27_vm4, %v26_v11  }
  0x7c   :  { %v32_v12 = vpop.permute.xlu0 %31   ;;  %v38_v13 = vpop.permute.xlu1 %37  }
  0x7d   :  { %34 = vst.msk [vmem:[#allocation0] sm:$0x1] %vm33_vm5, %v32_v12  }
  0x7e   :  { %40 = vst.msk [vmem:[#allocation0] sm:$0x1] %vm39_vm6, %v38_v13  }
  0x80   :  { %v44_v14 = vpop.permute.xlu0 %43  }
  0x81   :  { %46 = vst.msk [vmem:[#allocation0] sm:$0x1] %vm45_vm7, %v44_v14  }
  0x88   :  { %v50_v15 = vld [vmem:[#allocation0] sm:$0x1] }
  0x89   :  { %52 = vst [vmem:[%s112_s1] sm:$0x1] %v50_v15 }

// kernel: tile.28
= control target key start
LH: loop header
LB: loop body
LE: loop exit
PB: predicated region body
PF: predicated region fallthrough
CT: control target
= control target key end

     0   :  { %s22_s0 = inlined_call_operand.vmem [shape: f32[16], index: 0, kind: input, shape index: {}]   ;;  %s23_s1 = inlined_call_operand.vmem [shape: f32[4,16], index: 1, kind: output, shape index: {}]  }
   0x1   :  { %v4_v0 = vld [vmem:[%s22_s0] ss:$0 sm:$0xff] }
   0x2   :  { %5 = vst [vmem:[%s23_s1] sm:$0xf] %v4_v0 }

// kernel: tile.29
= control target key start
LH: loop header
LB: loop body
LE: loop exit
PB: predicated region body
PF: predicated region fallthrough
CT: control target
= control target key end

     0   :  { %vm7_vm0 = vcmask 130048   ;;  %s37_s8 = smov 16   ;;  %s38_s9 = smov 32   ;;  %vm13_vm1 = vcmask 523648   ;;  %vm19_vm2 = vcmask 392448   ;;  %vm25_vm3 = vcmask 261248   ;;  %s55_s0 = inlined_call_operand.vmem [shape: f32[4,16], index: 0, kind: input, shape index: {}]   ;;  %s56_s1 = inlined_call_operand.vmem [shape: f32[1,64], index: 1, kind: output, shape index: {}]  }
   0x1   :  { %v4_v0 = vld [vmem:[%s55_s0] sm:$0xf]  ;;  %s36_s0 = smov 48  }
   0x2   :  { %5 = vst [vmem:[#allocation1] sm:$0xf] %v4_v0 }
   0x9   :  { %v10_v1 = vld [vmem:[#allocation1 + $0x3] sm:$0x1]   ;;  %v22_v2 = vld [vmem:[#allocation1 + $0x1] sm:$0x1]   ;;  %v6_v3 = vld [vmem:[#allocation1] sm:$0x1]  }
   0xa   :  { %11 = vrot.lane.b32.xlu0 %v10_v1, %s36_s0  ;;  %23 = vrot.lane.b32.xlu1 %v22_v2, %s37_s8  ;;  %v16_v4 = vld [vmem:[#allocation1 + $0x2] sm:$0x1]   ;;  %8 = vst.msk [vmem:[#allocation0] sm:$0x1] %vm7_vm0, %v6_v3  }
   0xe   :  { %17 = vrot.lane.b32.xlu0 %v16_v4, %s38_s9 }
  0x7c   :  { %v12_v5 = vpop.permute.xlu0 %11   ;;  %v24_v6 = vpop.permute.xlu1 %23  }
  0x7d   :  { %14 = vst.msk [vmem:[#allocation0] sm:$0x1] %vm13_vm1, %v12_v5  }
  0x80   :  { %v18_v7 = vpop.permute.xlu0 %17  }
  0x81   :  { %20 = vst.msk [vmem:[#allocation0] sm:$0x1] %vm19_vm2, %v18_v7  }
  0x82   :  { %26 = vst.msk [vmem:[#allocation0] sm:$0x1] %vm25_vm3, %v24_v6  }
  0x89   :  { %v30_v8 = vld [vmem:[#allocation0] sm:$0x1] }
  0x8a   :  { %32 = vst [vmem:[%s56_s1] sm:$0x1] %v30_v8 }

// kernel: most_model_forward.1
= control target key start
LH: loop header
LB: loop body
LE: loop exit
PB: predicated region body
PF: predicated region fallthrough
CT: control target
= control target key end

     0   :  { %19 = vsyncpa [#allocation3], 0  ;;  %v1917_v3 = vmov 0.0|0.0   ;;  %vm1918_vm0 = vmmov 0   ;;  %v1919_v11 = vmov 0.0   ;;  %s2381_s0 = inlined_call_operand.vmem [shape: f32[6,8,64], index: 0, kind: input, shape index: {}]   ;;  %s2382_s1 = inlined_call_operand.vmem [shape: f32[3,64,64], index: 1, kind: input, shape index: {}]   ;;  %s2383_s2 = inlined_call_operand.vmem [shape: f32[1,64], index: 2, kind: input, shape index: {}]   ;;  %s2384_s3 = inlined_call_operand.vmem [shape: f32[3,64,64], index: 3, kind: input, shape index: {}]   ;;  %s2385_s4 = inlined_call_operand.vmem [shape: f32[1,64], index: 4, kind: input, shape index: {}]   ;;  %s2386_s5 = inlined_call_operand.vmem [shape: f32[8,8], index: 5, kind: input, shape index: {}]   ;;  %s2387_s6 = inlined_call_operand.vmem [shape: f32[2,8], index: 6, kind: input, shape index: {}]   ;;  %s2388_s7 = inlined_call_operand.vmem [shape: f32[64,64], index: 7, kind: input, shape index: {}]   ;;  %s2389_s8 = inlined_call_operand.vmem [shape: f32[64,10], index: 8, kind: input, shape index: {}]   ;;  %s2390_s9 = inlined_call_operand.vmem [shape: f32[1,10], index: 9, kind: input, shape index: {}]   ;;  %s2391_s10 = inlined_call_operand.vmem [shape: f32[64,10], index: 10, kind: input, shape index: {}]   ;;  %s2392_s11 = inlined_call_operand.vmem [shape: f32[1,10], index: 11, kind: input, shape index: {}]   ;;  %s2393_s12 = inlined_call_operand.hbm [shape: f32[2,10], index: 12, kind: output, shape index: {0}]   ;;  %s2394_s13 = inlined_call_operand.hbm [shape: f32[2,10], index: 13, kind: output, shape index: {1}]  }
   0x1   :  { %v1306_v0 = vld [vmem:[%s2382_s1 + $0x40] sm:$0xff]  ;;  %v1307_v1 = vld [vmem:[%s2382_s1 + $0x48] sm:$0xff]  ;;  %1718 = vmatprep.subr.bf16.mxu0 %v1917_v3  ;;  %1730 = vmatprep.subr.bf16.mxu1 %v1917_v3  ;;  %v1308_v6 = vld [vmem:[%s2382_s1 + $0x50] sm:$0xff] }
   0x2   :  { %v46_v2 = vld [vmem:[%s2382_s1] sm:$0xff]  ;;  %v1719_v4 = vpack.c.bf16 %v1307_v1, %v1306_v0  ;;  %v47_v5 = vld [vmem:[%s2382_s1 + $0x8] sm:$0xff]  ;;  %v1309_v7 = vld [vmem:[%s2382_s1 + $0x58] sm:$0xff]  ;;  %1491 = vmatprep.mubr.msk.f32.mxu0 %vm1918_vm0, %v1919_v11  ;;  %1510 = vmatprep.mubr.msk.f32.mxu1 %vm1918_vm0, %v1919_v11 }
   0x3   :  { %v2012_v8 = vpack.c.bf16 %v47_v5, %v46_v2  ;;  %v48_v9 = vld [vmem:[%s2382_s1 + $0x10] sm:$0xff]  ;;  %v49_v10 = vld [vmem:[%s2382_s1 + $0x18] sm:$0xff]  ;;  %v1722_v12 = vpack.c.bf16 %v1309_v7, %v1308_v6  ;;  %v1310_v14 = vld [vmem:[%s2382_s1 + $0x60] sm:$0xff] }
   0x4   :  { %1720 = vmatpush3.bf16.msra.mxu0 %v1719_v4  ;;  %v2026_v13 = vpack.c.bf16 %v49_v10, %v48_v9  ;;  %v1311_v15 = vld [vmem:[%s2382_s1 + $0x68] sm:$0xff]  ;;  %v50_v16 = vld [vmem:[%s2382_s1 + $0x20] sm:$0xff]  ;;  %v1312_v20 = vld [vmem:[%s2382_s1 + $0x70] sm:$0xff] }
   0x5   :  { %1732 = vmatpush3.bf16.msra.mxu1 %v2012_v8  ;;  %1721 = vmatprep.subr.bf16.mxu0 %v1917_v3  ;;  %v51_v17 = vld [vmem:[%s2382_s1 + $0x28] sm:$0xff]  ;;  %v1725_v18 = vpack.c.bf16 %v1311_v15, %v1310_v14  ;;  %v1313_v21 = vld [vmem:[%s2382_s1 + $0x78] sm:$0xff]  ;;  %v52_v22 = vld [vmem:[%s2382_s1 + $0x30] sm:$0xff] }
   0x6   :  { %1733 = vmatprep.subr.bf16.mxu1 %v1917_v3  ;;  %v2043_v19 = vpack.c.bf16 %v51_v17, %v50_v16  ;;  %v53_v23 = vld [vmem:[%s2382_s1 + $0x38] sm:$0xff] }
   0x8   :  { %1723 = vmatpush3.bf16.msra.mxu0 %v1722_v12 }
   0x9   :  { %1735 = vmatpush3.bf16.msra.mxu1 %v2026_v13  ;;  %1724 = vmatprep.subr.bf16.mxu0 %v1917_v3 }
   0xa   :  { %1736 = vmatprep.subr.bf16.mxu1 %v1917_v3 }
   0xb   :  { %20 = vsyncpa [#allocation5], 0  ;;  %v1728_v24 = vpack.c.bf16 %v1313_v21, %v1312_v20  ;;  %v1740_v25 = vpack.c.bf16 %v53_v23, %v52_v22  ;;  %v1317_v26 = vld [vmem:[%s2382_s1 + $0x80] sm:$0xff]  ;;  %v1318_v27 = vld [vmem:[%s2382_s1 + $0x88] sm:$0xff]  ;;  %vm65_vm1 = vcmask 523264   ;;  %vm535_vm2 = vcmask 64512  }
   0xc   :  { %1726 = vmatpush3.bf16.msra.mxu0 %v1725_v18  ;;  %v1305_v28 = vld [vmem:[%s2381_s0 + $0x8] sm:$0xff]  ;;  %v1743_v29 = vpack.c.bf16 %v1318_v27, %v1317_v26  ;;  %v45_v30 = vld [vmem:[%s2381_s0] sm:$0xff]  ;;  %v1319_v31 = vld [vmem:[%s2382_s1 + $0x90] sm:$0xff]  ;;  %vm1027_vm3 = vcmask 74752   ;;  %s1920_s14 = smov [#allocation2]  }
   0xd   :  { %1738 = vmatpush3.bf16.msra.mxu1 %v2043_v19  ;;  %1727 = vmatprep.subr.bf16.mxu0 %v1917_v3  ;;  %v1320_v32 = vld [vmem:[%s2382_s1 + $0x98] sm:$0xff]  ;;  %v1321_v34 = vld [vmem:[%s2382_s1 + $0xa0] sm:$0xff]  ;;  %v1322_v35 = vld [vmem:[%s2382_s1 + $0xa8] sm:$0xff] }
   0xe   :  { %1739 = vmatprep.subr.bf16.mxu1 %v1917_v3  ;;  %v1746_v33 = vpack.c.bf16 %v1320_v32, %v1319_v31  ;;  %v1749_v36 = vpack.c.bf16 %v1322_v35, %v1321_v34  ;;  %v1323_v37 = vld [vmem:[%s2382_s1 + $0xb0] sm:$0xff]  ;;  %v1324_v38 = vld [vmem:[%s2382_s1 + $0xb8] sm:$0xff]  ;;  %v1327_v41 = vld [vmem:[%s2381_s0 + $0x20] sm:$0xff] }
   0xf   :  { %v1752_v39 = vpack.c.bf16 %v1324_v38, %v1323_v37  ;;  %v1316_v40 = vld [vmem:[%s2381_s0 + $0x10] sm:$0xff]  ;;  %v1326_v42 = vld [vmem:[%s2381_s0 + $0x18] sm:$0xff]  ;;  %v1330_v43 = vld [vmem:[%s2381_s0 + $0x28] sm:$0xff] }
  0x10   :  { %1729 = vmatpush3.bf16.msra.mxu0 %v1728_v24  ;;  %v1334_v44 = vld [vmem:[%s2384_s3 + $0x40] sm:$0xff]  ;;  %v1335_v45 = vld [vmem:[%s2384_s3 + $0x48] sm:$0xff]  ;;  %v1336_v46 = vld [vmem:[%s2384_s3 + $0x50] sm:$0xff] }
  0x11   :  { %1741 = vmatpush3.bf16.msra.mxu1 %v1740_v25  ;;  %1742 = vmatprep.subr.bf16.mxu0 %v1917_v3  ;;  %v1791_v47 = vpack.c.bf16 %v1335_v45, %v1334_v44  ;;  %v1337_v48 = vld [vmem:[%s2384_s3 + $0x58] sm:$0xff]  ;;  %v1338_v50 = vld [vmem:[%s2384_s3 + $0x60] sm:$0xff]  ;;  %v1339_v51 = vld [vmem:[%s2384_s3 + $0x68] sm:$0xff] }
  0x12   :  { %1754 = vmatprep.subr.bf16.mxu1 %v1917_v3  ;;  %v1794_v49 = vpack.c.bf16 %v1337_v48, %v1336_v46  ;;  %v1797_v52 = vpack.c.bf16 %v1339_v51, %v1338_v50  ;;  %v1340_v53 = vld [vmem:[%s2384_s3 + $0x70] sm:$0xff]  ;;  %v1341_v54 = vld [vmem:[%s2384_s3 + $0x78] sm:$0xff]  ;;  %v1332_v62 = vld [vmem:[%s2383_s2] ss:$0 sm:$0xff] }
  0x13   :  { %1492 = vmatmul.mubr.msk.f32.vlgmr.msra.gmra.mrb[0].mxu0 %vm65_vm1, %v1305_v28  ;;  %v1800_v55 = vpack.c.bf16 %v1341_v54, %v1340_v53  ;;  %v1344_v2 = vld [vmem:[%s2384_s3 + $0x80] sm:$0xff]  ;;  %v1346_v9 = vld [vmem:[%s2384_s3 + $0x90] sm:$0xff]  ;;  %v1347_v10 = vld [vmem:[%s2384_s3 + $0x98] sm:$0xff] }
  0x14   :  { %1511 = vmatmul.mubr.msk.f32.vlgmr.msra.gmra.mrb[0].mxu1 %vm65_vm1, %v45_v30  ;;  %1744 = vmatpush3.bf16.msra.mxu0 %v1743_v29  ;;  %v1349_v14 = vld [vmem:[%s2384_s3 + $0xa8] sm:$0xff]  ;;  %v1350_v16 = vld [vmem:[%s2384_s3 + $0xb0] sm:$0xff]  ;;  %v1351_v17 = vld [vmem:[%s2384_s3 + $0xb8] sm:$0xff] }
  0x15   :  { %1756 = vmatpush3.bf16.msra.mxu1 %v1719_v4  ;;  %1745 = vmatprep.subr.bf16.mxu0 %v1917_v3  ;;  %v1345_v4 = vld [vmem:[%s2384_s3 + $0x88] sm:$0xff]  ;;  %v534_v27 = vld [vmem:[%s2386_s5] sm:$0xff]  ;;  %v611_v31 = vld [vmem:[%s2384_s3 + $0x10] sm:$0xff]  ;;  %s1283_s5 = sshll.u32 %s1920_s14, 4  ;;  %s1284_s5 = int_to_ptr.vmem [resolvable:$true] %s1283_s5 }
  0x16   :  { %1757 = vmatprep.subr.bf16.mxu1 %v1917_v3  ;;  %1529 = vmatprep.mubr.msk.f32.mxu0 %vm1918_vm0, %v1919_v11  ;;  %v1815_v7 = vpack.c.bf16 %v1345_v4, %v1344_v2  ;;  %v610_v30 = vld [vmem:[%s2384_s3 + $0x8] sm:$0xff]  ;;  %v613_v35 = vld [vmem:[%s2384_s3 + $0x20] sm:$0xff]  ;;  %v615_v38 = vld [vmem:[%s2384_s3 + $0x30] sm:$0xff]  ;;  %s1869_s15 = scalar_lea.vmem %s1284_s5, 32  ;;  %p1874_p1 = scmp.lt.s32.totalorder %s1284_s5, %s1284_s5 }
  0x17   :  { %1548 = vmatprep.mubr.msk.f32.mxu1 %vm1918_vm0, %v1919_v11  ;;  %v867_v44 = vld [vmem:[%s2389_s8 + $0x8] sm:$0xff]  ;;  %v869_v48 = vld [vmem:[%s2389_s8 + $0x18] sm:$0xff]  ;;  %v870_v53 = vld [vmem:[%s2389_s8 + $0x20] sm:$0xff]  ;;  %p1870_p0 = scmp.ne.s32.totalorder %s1284_s5, %s1869_s15  ;;  %p1875_p2 = scmp.lt.s32.totalorder %s1869_s15, %s1869_s15 }
  0x18   :  { %1747 = vmatpush3.bf16.msra.mxu0 %v1746_v33  ;;  %v871_v54 = vld [vmem:[%s2389_s8 + $0x28] sm:$0xff] }
  0x19   :  { %1759 = vmatpush3.bf16.msra.mxu1 %v1722_v12  ;;  %1748 = vmatprep.subr.bf16.mxu0 %v1917_v3  ;;  %v1818_v12 = vpack.c.bf16 %v1347_v10, %v1346_v9  ;;  %v1035_v2 = vld [vmem:[%s2388_s7 + $0x28] sm:$0xff]  ;;  %p1876_p3 = por %p1875_p2, %p1874_p1 }
  0x1a   :  { %1760 = vmatprep.subr.bf16.mxu1 %v1917_v3 }
  0x1b   :  { %p1877_p4 = pnand %p1876_p3, %p1870_p0 }
  0x1c   :  { %1750 = vmatpush3.bf16.msra.mxu0 %v1749_v36 }
  0x1d   :  { %1762 = vmatpush3.bf16.msra.mxu1 %v1725_v18  ;;  %1751 = vmatprep.subr.bf16.mxu0 %v1917_v3 }
  0x1e   :  { %1763 = vmatprep.subr.bf16.mxu1 %v1917_v3 }
  0x20   :  { %1753 = vmatpush3.bf16.msra.mxu0 %v1752_v39 }
  0x21   :  { %1765 = vmatpush3.bf16.msra.mxu1 %v1728_v24  ;;  %1766 = vmatprep.subr.bf16.mxu0 %v1917_v3 }
  0x22   :  { %1778 = vmatprep.subr.bf16.mxu1 %v1917_v3 }
  0x23   :  { %1530 = vmatmul.mubr.msk.f32.vlgmr.msra.gmra.mrb[2].mxu0 %vm65_vm1, %v1316_v40 }
  0x24   :  { %1768 = vmatpush3.bf16.msra.mxu0 %v2012_v8  ;;  %1549 = vmatmul.mubr.msk.f32.vlgmr.msra.gmra.mrb[2].mxu1 %vm65_vm1, %v1327_v41 }
  0x25   :  { %1780 = vmatpush3.bf16.msra.mxu1 %v1743_v29  ;;  %1769 = vmatprep.subr.bf16.mxu0 %v1917_v3  ;;  %v609_v29 = vld [vmem:[%s2384_s3] sm:$0xff] }
  0x26   :  { %1781 = vmatprep.subr.bf16.mxu1 %v1917_v3  ;;  %1567 = vmatprep.mubr.msk.f32.mxu0 %vm1918_vm0, %v1919_v11  ;;  %v1803_v32 = vpack.c.bf16 %v610_v30, %v609_v29  ;;  %v1122_v29 = vld [vmem:[%s2391_s10 + $0x38] sm:$0xff] }
  0x27   :  { %1586 = vmatprep.mubr.msk.f32.mxu1 %vm1918_vm0, %v1919_v11 }
  0x28   :  { %1771 = vmatpush3.bf16.msra.mxu0 %v2026_v13  ;;  %v1348_v13 = vld [vmem:[%s2384_s3 + $0xa0] sm:$0xff] }
  0x29   :  { %1783 = vmatpush3.bf16.msra.mxu1 %v1746_v33  ;;  %1772 = vmatprep.subr.bf16.mxu0 %v1917_v3  ;;  %v1821_v15 = vpack.c.bf16 %v1349_v14, %v1348_v13  ;;  %v612_v33 = vld [vmem:[%s2384_s3 + $0x18] sm:$0xff] }
  0x2a   :  { %1784 = vmatprep.subr.bf16.mxu1 %v1917_v3  ;;  %v1806_v34 = vpack.c.bf16 %v612_v33, %v611_v31 }
  0x2c   :  { %1774 = vmatpush3.bf16.msra.mxu0 %v2043_v19  ;;  %v1824_v19 = vpack.c.bf16 %v1351_v17, %v1350_v16  ;;  %v864_v17 = vld [vmem:[%s2387_s6] sm:$0x3] }
  0x2d   :  { %1786 = vmatpush3.bf16.msra.mxu1 %v1749_v36  ;;  %1775 = vmatprep.subr.bf16.mxu0 %v1917_v3  ;;  %v614_v36 = vld [vmem:[%s2384_s3 + $0x28] sm:$0xff] }
  0x2e   :  { %1787 = vmatprep.subr.bf16.mxu1 %v1917_v3  ;;  %v1809_v37 = vpack.c.bf16 %v614_v36, %v613_v35 }
  0x30   :  { %1777 = vmatpush3.bf16.msra.mxu0 %v1740_v25 }
  0x31   :  { %1789 = vmatpush3.bf16.msra.mxu1 %v1752_v39  ;;  %1589 = vmatprep.subr.mxu0 %v1919_v11  ;;  %v616_v39 = vld [vmem:[%s2384_s3 + $0x38] sm:$0xff] }
  0x32   :  { %1790 = vmatprep.subr.bf16.mxu1 %v1917_v3  ;;  %v1812_v40 = vpack.c.bf16 %v616_v39, %v615_v38  ;;  %v1355_v38 = vld [vmem:[%s2390_s9] ss:$0 sm:$0xff] }
  0x33   :  { %1568 = vmatmul.mubr.msk.f32.vlgmr.msra.gmra.mrb[4].mxu0 %vm65_vm1, %v1326_v42 }
  0x34   :  { %1587 = vmatmul.mubr.msk.f32.vlgmr.msra.gmra.mrb[4].mxu1 %vm65_vm1, %v1330_v43  ;;  %1591 = vmatprep.mubr.msk.f32.mxu0 %vm1918_vm0, %v1919_v11  ;;  %v866_v43 = vld [vmem:[%s2389_s8] sm:$0xff] }
  0x35   :  { %1610 = vmatprep.mubr.msk.f32.mxu1 %vm1918_vm0, %v1919_v11  ;;  %1792 = vmatpush3.bf16.msra.mxu1 %v1791_v47  ;;  %v1827_v45 = vpack.c.bf16 %v867_v44, %v866_v43  ;;  %v868_v47 = vld [vmem:[%s2389_s8 + $0x10] sm:$0xff] }
  0x36   :  { %1793 = vmatprep.subr.bf16.mxu1 %v1917_v3 }
  0x39   :  { %1795 = vmatpush3.bf16.msra.mxu1 %v1794_v49 }
  0x3a   :  { %1796 = vmatprep.subr.bf16.mxu1 %v1917_v3 }
  0x3d   :  { %1798 = vmatpush3.bf16.msra.mxu1 %v1797_v52  ;;  %v1830_v52 = vpack.c.bf16 %v869_v48, %v868_v47 }
  0x3e   :  { %1799 = vmatprep.subr.bf16.mxu1 %v1917_v3 }
  0x41   :  { %1801 = vmatpush3.bf16.msra.mxu1 %v1800_v55  ;;  %v1833_v55 = vpack.c.bf16 %v871_v54, %v870_v53 }
  0x42   :  { %1814 = vmatprep.subr.bf16.mxu1 %v1917_v3 }
  0xe6   :  { %v135_v56 = vpop.f32.mrb[0].mxu0 }
  0xe7   :  { %v1493_v57 = vpop.f32.mrb[1].mxu0  ;;  %v208_v58 = vpop.f32.mrb[0].mxu1 }
  0xe8   :  { %v209_v59 = vadd.f32 %v208_v58, %v135_v56  ;;  %v1512_v60 = vpop.f32.mrb[1].mxu1  ;;  %v872_v56 = vld [vmem:[%s2389_s8 + $0x30] sm:$0xff]  ;;  %v873_v57 = vld [vmem:[%s2389_s8 + $0x38] sm:$0xff] }
  0xe9   :  { %v1836_v58 = vpack.c.bf16 %v873_v57, %v872_v56  ;;  %v1031_v60 = vld [vmem:[%s2388_s7 + $0x8] sm:$0xff] }
  0xf6   :  { %v292_v61 = vpop.f32.mrb[2].mxu0 }
  0xf7   :  { %v296_v63 = vadd.f32 %v292_v61, %v209_v59  ;;  %v1531_v0 = vpop.f32.mrb[3].mxu0  ;;  %v370_v1 = vpop.f32.mrb[2].mxu1  ;;  %v1030_v59 = vld [vmem:[%s2388_s7] sm:$0xff] }
  0xf8   :  { %v1550_v5 = vpop.f32.mrb[3].mxu1  ;;  %v1839_v61 = vpack.c.bf16 %v1031_v60, %v1030_v59 }
  0xf9   :  { %v530_v6 = vadd.f32 %v1332_v62, %v296_v63  ;;  %v1033_v63 = vld [vmem:[%s2388_s7 + $0x18] sm:$0xff]  ;;  %v1036_v5 = vld [vmem:[%s2388_s7 + $0x30] sm:$0xff] }
  0xfb   :  { %v531_v8 = vmax.f32 %v530_v6, 0.0  ;;  %v1037_v6 = vld [vmem:[%s2388_s7 + $0x38] sm:$0xff] }
  0xfd   :  { %1611 = vmatmul.mubr.msk.f32.vlgmr.msra.gmra.mrb[6].mxu1 %vm65_vm1, %v531_v8 }
  0xfe   :  { %1816 = vmatpush3.bf16.msra.mxu1 %v1815_v7  ;;  %1648 = vmatprep.mubr.msk.f32.mxu1 %vm1918_vm0, %v1919_v11  ;;  %v1848_v7 = vpack.c.bf16 %v1037_v6, %v1036_v5 }
  0xff   :  { %1817 = vmatprep.subr.bf16.mxu1 %v1917_v3 }
 0x102   :  { %1819 = vmatpush3.bf16.msra.mxu1 %v1818_v12  ;;  %v1353_v12 = vld [vmem:[%s2385_s4] ss:$0 sm:$0xff] }
 0x103   :  { %1820 = vmatprep.subr.bf16.mxu1 %v1917_v3 }
 0x106   :  { %v443_v18 = vpop.f32.mrb[4].mxu0  ;;  %1822 = vmatpush3.bf16.msra.mxu1 %v1821_v15 }
 0x107   :  { %v444_v20 = vadd.f32 %v443_v18, %v370_v1  ;;  %v1569_v21 = vpop.f32.mrb[5].mxu0  ;;  %v518_v22 = vpop.f32.mrb[4].mxu1  ;;  %1823 = vmatprep.subr.bf16.mxu1 %v1917_v3  ;;  %v1034_v1 = vld [vmem:[%s2388_s7 + $0x20] sm:$0xff] }
 0x108   :  { %v1588_v23 = vpop.f32.mrb[5].mxu1  ;;  %v1845_v4 = vpack.c.bf16 %v1035_v2, %v1034_v1  ;;  %v1116_v21 = vld [vmem:[%s2391_s10 + $0x8] sm:$0xff] }
 0x109   :  { %v522_v24 = vadd.f32 %v518_v22, %v444_v20  ;;  %v1115_v20 = vld [vmem:[%s2391_s10] sm:$0xff]  ;;  %v1117_v23 = vld [vmem:[%s2391_s10 + $0x10] sm:$0xff] }
 0x10a   :  { %1825 = vmatpush3.bf16.msra.mxu1 %v1824_v19  ;;  %v1851_v22 = vpack.c.bf16 %v1116_v21, %v1115_v20 }
 0x10b   :  { %v532_v25 = vadd.f32 %v1332_v62, %v522_v24  ;;  %1670 = vmatprep.subr.mxu1 %v1919_v11  ;;  %v1032_v62 = vld [vmem:[%s2388_s7 + $0x10] sm:$0xff]  ;;  %v1119_v24 = vld [vmem:[%s2391_s10 + $0x20] sm:$0xff] }
 0x10c   :  { %v1842_v0 = vpack.c.bf16 %v1033_v63, %v1032_v62 }
 0x10d   :  { %v533_v26 = vmax.f32 %v532_v25, 0.0 }
 0x10f   :  { %v865_v28 = vadd.f32 %v533_v26, %v531_v8  ;;  %1590 = vmatpush3.msra.mxu0 %v533_v26  ;;  %1649 = vmatmul.mubr.msk.f32.vlgmr.msra.gmra.mrb[8].mxu1 %vm65_vm1, %v533_v26  ;;  %v1120_v26 = vld [vmem:[%s2391_s10 + $0x28] sm:$0xff] }
 0x110   :  { %1592 = vmatmul.mubr.msk.f32.vlgmr.msra.gmra.mrb[6].mxu0 %vm535_vm2, %v534_v27  ;;  %1802 = vmatprep.subr.bf16.mxu0 %v1917_v3  ;;  %v1857_v27 = vpack.c.bf16 %v1120_v26, %v1119_v24 }
 0x111   :  { %1629 = vmatprep.mubr.msk.f32.mxu0 %vm1918_vm0, %v1919_v11  ;;  %1672 = vmatprep.mubr.msk.f32.mxu1 %vm1918_vm0, %v1919_v11 }
 0x112   :  { %1804 = vmatpush3.bf16.msra.mxu0 %v1803_v32 }
 0x113   :  { %1805 = vmatprep.subr.bf16.mxu0 %v1917_v3 }
 0x116   :  { %1807 = vmatpush3.bf16.msra.mxu0 %v1806_v34 }
 0x117   :  { %1808 = vmatprep.subr.bf16.mxu0 %v1917_v3 }
 0x11a   :  { %1810 = vmatpush3.bf16.msra.mxu0 %v1809_v37 }
 0x11b   :  { %1811 = vmatprep.subr.bf16.mxu0 %v1917_v3 }
 0x11e   :  { %1813 = vmatpush3.bf16.msra.mxu0 %v1812_v40 }
 0x11f   :  { %1826 = vmatprep.subr.bf16.mxu0 %v1917_v3 }
 0x1d0   :  { %v695_v41 = vpop.f32.mrb[6].mxu1 }
 0x1d1   :  { %v1612_v42 = vpop.f32.mrb[7].mxu1 }
 0x1e2   :  { %v850_v46 = vpop.f32.mrb[8].mxu1 }
 0x1e3   :  { %v605_v49 = vpop.f32.mrb[6].mxu0  ;;  %v1650_v50 = vpop.f32.mrb[9].mxu1 }
 0x1e4   :  { %v1593_v51 = vpop.f32.mrb[7].mxu0  ;;  %1630 = vmatmul.mubr.msk.f32.vlgmr.msra.gmra.mrb[8].mxu0 %vm65_vm1, %v605_v49 }
 0x1e5   :  { %1828 = vmatpush3.bf16.msra.mxu0 %v1827_v45  ;;  %1667 = vmatprep.mubr.msk.f32.mxu0 %vm1918_vm0, %v1919_v11 }
 0x1e6   :  { %1829 = vmatprep.subr.bf16.mxu0 %v1917_v3 }
 0x1e9   :  { %1831 = vmatpush3.bf16.msra.mxu0 %v1830_v52 }
 0x1ea   :  { %1832 = vmatprep.subr.bf16.mxu0 %v1917_v3 }
 0x1ed   :  { %1834 = vmatpush3.bf16.msra.mxu0 %v1833_v55 }
 0x1ee   :  { %1835 = vmatprep.subr.bf16.mxu0 %v1917_v3 }
 0x1f1   :  { %1837 = vmatpush3.bf16.msra.mxu0 %v1836_v58 }
 0x1f2   :  { %1838 = vmatprep.subr.bf16.mxu0 %v1917_v3 }
 0x1f4   :  { %1668 = vmatmul.mubr.msk.f32.vlgmr.msra.gmra.mrb[10].mxu0 %vm65_vm1, %v865_v28  ;;  %v1121_v28 = vld [vmem:[%s2391_s10 + $0x30] sm:$0xff] }
 0x1f5   :  { %1840 = vmatpush3.bf16.msra.mxu0 %v1839_v61  ;;  %1691 = vmatprep.mubr.msk.f32.mxu0 %vm1918_vm0, %v1919_v11  ;;  %v1860_v30 = vpack.c.bf16 %v1122_v29, %v1121_v28 }
 0x1f6   :  { %1841 = vmatprep.subr.bf16.mxu0 %v1917_v3 }
 0x1f9   :  { %1843 = vmatpush3.bf16.msra.mxu0 %v1842_v0 }
 0x1fa   :  { %1844 = vmatprep.subr.bf16.mxu0 %v1917_v3 }
 0x1fd   :  { %1846 = vmatpush3.bf16.msra.mxu0 %v1845_v4 }
 0x1fe   :  { %1847 = vmatprep.subr.bf16.mxu0 %v1917_v3 }
 0x201   :  { %1849 = vmatpush3.bf16.msra.mxu0 %v1848_v7 }
 0x202   :  { %1713 = vmatprep.subr.mxu0 %v1919_v11 }
 0x2b7   :  { %v768_v8 = vpop.f32.mrb[8].mxu0 }
 0x2b8   :  { %v769_v9 = vadd.f32 %v768_v8, %v695_v41  ;;  %v1631_v10 = vpop.f32.mrb[9].mxu0 }
 0x2ba   :  { %v854_v13 = vadd.f32 %v850_v46, %v769_v9 }
 0x2bc   :  { %v862_v14 = vadd.f32 %v1353_v12, %v854_v13 }
 0x2be   :  { %v863_v15 = vmax.f32 %v862_v14, 0.0 }
 0x2c0   :  { %v1029_v16 = vmul.f32 %v863_v15, %v863_v15 }
 0x2c2   :  { %1692 = vmatmul.mubr.msk.f32.vlgmr.msra.gmra.mrb[12].mxu0 %vm65_vm1, %v1029_v16 }
 0x2c3   :  { %1715 = vmatprep.mubr.msk.f32.mxu0 %vm1918_vm0, %v1919_v11 }
 0x2c7   :  { %v943_v18 = vpop.f32.mrb[10].mxu0 }
 0x2c8   :  { %v1669_v19 = vpop.f32.mrb[11].mxu0  ;;  %1671 = vmatpush3.msra.mxu1 %v943_v18 }
 0x2c9   :  { %1673 = vmatmul.mubr.msk.f32.vlgmr.msra.gmra.mrb[10].mxu1 %vm535_vm2, %v864_v17  ;;  %1850 = vmatprep.subr.bf16.mxu1 %v1917_v3 }
 0x2ca   :  { %1710 = vmatprep.mubr.msk.f32.mxu1 %vm1918_vm0, %v1919_v11  ;;  %1852 = vmatpush3.bf16.msra.mxu1 %v1851_v22  ;;  %v1118_v11 = vld [vmem:[%s2391_s10 + $0x18] sm:$0xff] }
 0x2cb   :  { %1853 = vmatprep.subr.bf16.mxu1 %v1917_v3  ;;  %v1854_v25 = vpack.c.bf16 %v1118_v11, %v1117_v23 }
 0x2ce   :  { %1855 = vmatpush3.bf16.msra.mxu1 %v1854_v25 }
 0x2cf   :  { %1856 = vmatprep.subr.bf16.mxu1 %v1917_v3 }
 0x2d2   :  { %1858 = vmatpush3.bf16.msra.mxu1 %v1857_v27 }
 0x2d3   :  { %1859 = vmatprep.subr.bf16.mxu1 %v1917_v3  ;;  %v1114_v3 = vld [vmem:[%s2387_s6] sm:$0x3] }
 0x2d6   :  { %1861 = vmatpush3.bf16.msra.mxu1 %v1860_v30 }
 0x395   :  { %v1107_v31 = vpop.f32.mrb[12].mxu0 }
 0x396   :  { %v1111_v32 = vmax.f32 %v1107_v31, 1e-24  ;;  %v1693_v33 = vpop.f32.mrb[13].mxu0 }
 0x398   :  { %1867 = vrsqrt.f32 %v1111_v32 }
 0x39c   :  { %v1023_v34 = vpop.f32.mrb[10].mxu1 }
 0x39d   :  { %v1674_v35 = vpop.f32.mrb[11].mxu1  ;;  %v1024_v39 = vadd.f32 %v1355_v38, %v1023_v34 }
 0x39f   :  { %1028 = vst.msk [vmem:[#allocation2] sm:$0x3] %vm1027_vm3, %v1024_v39 }
 0x3a2   :  { %v1868_v36 = vpop.eup %1867 }
 0x3a3   :  { %v1113_v37 = vmul.f32 %v1868_v36, %v863_v15 }
 0x3a5   :  { %1711 = vmatmul.mubr.msk.f32.vlgmr.msra.gmra.mrb[12].mxu1 %vm65_vm1, %v1113_v37 }
 0x478   :  { %v1192_v40 = vpop.f32.mrb[12].mxu1 }
 0x479   :  { %v1712_v41 = vpop.f32.mrb[13].mxu1  ;;  %1714 = vmatpush3.msra.mxu0 %v1192_v40 }
 0x47a   :  { %1716 = vmatmul.mubr.msk.f32.vlgmr.msra.gmra.mrb[14].mxu0 %vm535_vm2, %v1114_v3 }
 0x47b   :  { %1880 = shalt.err (!%p1877_p4)
}
 0x47c   :  { %s1881_s7 = scalar_lea.hbm %s2393_s12, 32 }
 0x47d   :  { %p1882_p5 = scmp.ne.s32.totalorder %s2393_s12, %s1881_s7  ;;  %p1885_p6 = scmp.lt.u32.totalorder %s1881_s7, %s2393_s12 }
 0x47f   :  { %p1887_p7 = pnand %p1885_p6, %p1882_p5 }
 0x481   :  { %1890 = shalt.err (!%p1887_p7)
}
 0x482   :  { %1286 = dma.vmem_to_hbm [thread:$0]  %s1284_s5, 32, %s2393_s12, [#allocation3]   ;;  %v1359_v42 = vld [vmem:[%s2392_s11] ss:$0 sm:$0xff] }
 0x483   :  { %s1921_s21 = smov [#allocation4]  }
 0x484   :  { %s1293_s22 = sshll.u32 %s1921_s21, 4  ;;  %s1294_s22 = int_to_ptr.vmem [resolvable:$true] %s1293_s22 }
 0x485   :  { %s1891_s23 = scalar_lea.vmem %s1294_s22, 32  ;;  %p1896_p9 = scmp.lt.s32.totalorder %s1294_s22, %s1294_s22 }
 0x486   :  { %p1892_p8 = scmp.ne.s32.totalorder %s1294_s22, %s1891_s23  ;;  %p1897_p10 = scmp.lt.s32.totalorder %s1891_s23, %s1891_s23 }
 0x488   :  { %p1898_p11 = por %p1897_p10, %p1896_p9 }
 0x48a   :  { %p1899_p12 = pnand %p1898_p11, %p1892_p8 }
 0x54d   :  { %v1272_v43 = vpop.f32.mrb[14].mxu0 }
 0x54e   :  { %v1273_v44 = vadd.f32 %v1359_v42, %v1272_v43  ;;  %v1717_v45 = vpop.f32.mrb[15].mxu0 }
 0x550   :  { %1276 = vst.msk [vmem:[#allocation4] sm:$0x3] %vm1027_vm3, %v1273_v44 }
 0x551   :  { %1902 = shalt.err (!%p1899_p12)
}
 0x552   :  { %s1903_s24 = scalar_lea.hbm %s2394_s13, 32 }
 0x553   :  { %p1904_p13 = scmp.ne.s32.totalorder %s2394_s13, %s1903_s24  ;;  %p1907_p0 = scmp.lt.u32.totalorder %s1903_s24, %s2394_s13 }
 0x555   :  { %p1909_p1 = pnand %p1907_p0, %p1904_p13 }
 0x557   :  { %1912 = shalt.err (!%p1909_p1)
}
 0x558   :  { %1296 = dma.vmem_to_hbm [thread:$0]  %s1294_s22, 32, %s2394_s13, [#allocation5]  }
 0x559   :  { %1913 = dma.done.wait [#allocation3], 32  }
 0x55a   :  { %1914 = vsyncadd [#allocation3], 4294967264 }
 0x55b   :  { %1915 = dma.done.wait [#allocation5], 32  }
 0x55c   :  { %1916 = vsyncadd [#allocation5], 4294967264 }
 0x55d   :  { %1303 = vsyncpa [#allocation3], 1 }
 0x55e   :  { %1304 = vsyncpa [#allocation5], 1 }

</bundles_post_ra>
